<compile_context>
chip_gen: v7x
topology: tpu7x:2x2x1
jax: 0.10.0
libtpu: 0.0.40
codegen_flags: <defaults>
</compile_context>

<pallas_src>
import functools

import jax
import jax.numpy as jnp
from jax.experimental import pallas as pl
from jax.experimental.pallas import tpu as pltpu


# ----------------------------------------------------------------------------
# Fused kernel
# ----------------------------------------------------------------------------
def vae_kernel(*refs, n_enc, n_dec):
    """refs = [x, eps2d, enc_w*, whead, enc_bias, dec_w*, dec_bias, out, zstats]."""
    x_ref, eps_ref = refs[0], refs[1]
    enc_w = refs[2:2 + n_enc]
    whead = refs[2 + n_enc]
    enc_b = refs[3 + n_enc]
    dec_w = refs[4 + n_enc:4 + n_enc + n_dec]
    dec_b = refs[4 + n_enc + n_dec]
    out_ref = refs[5 + n_enc + n_dec]
    zstats_ref = refs[6 + n_enc + n_dec]

    batch = x_ref.shape[0]
    n_samples = eps_ref.shape[0] // batch
    latent_dim = whead.shape[1] // 2

    def linear(h, w_ref, b_ref, row, relu):
        width = w_ref.shape[1]                              # static
        b = b_ref[row:row + 1, :width]                      # (1, width) broadcast row
        y = jnp.dot(h, w_ref[...], preferred_element_type=jnp.float32) + b
        return jnp.maximum(y, 0.0) if relu else y

    # ---------------- encoder trunk + fused mean/logvar head ----------------
    h = x_ref[...]
    for i in range(n_enc):
        h = linear(h, enc_w[i], enc_b, i, relu=True)
    zstats = linear(h, whead, enc_b, n_enc, relu=False)     # (B, 2L) = [mu | logvar]
    zstats_ref[...] = zstats

    # ---------------- reparameterization over the sample slab ---------------
    z_mean = zstats[:, :latent_dim]                          # (B, L)
    std = jnp.exp(0.5 * zstats[:, latent_dim:2 * latent_dim])  # (B, L), EUP once
    if n_samples > 1:
        z_mean_rep = jnp.tile(z_mean, (n_samples, 1))        # (S*B, L)
        std_rep = jnp.tile(std, (n_samples, 1))
    else:
        z_mean_rep, std_rep = z_mean, std
    z = z_mean_rep + std_rep * eps_ref[...]                  # (S*B, L)

    # ---------------- decoder ------------------------------------------------
    h = z
    for i in range(n_dec - 1):
        h = linear(h, dec_w[i], dec_b, i, relu=True)
    out_ref[...] = linear(h, dec_w[n_dec - 1], dec_b, n_dec - 1, relu=False)


# ----------------------------------------------------------------------------
# Wrapper
# ----------------------------------------------------------------------------
@jax.jit
def vae_forward(x, epsilon, enc_ws, whead, enc_bias, dec_ws, dec_bias):
    """Returns (out, z_mean, z_log_var) exactly like VAE.forward(x, sample_size)."""
    B, D = x.shape
    S, _, L = epsilon.shape
    eps2d = epsilon.reshape(S * B, L)                        # sample-major slab
    n_enc, n_dec = len(enc_ws), len(dec_ws)

    args = [x, eps2d, *enc_ws, whead, enc_bias, *dec_ws, dec_bias]
    vmem = pl.BlockSpec(memory_space=pltpu.MemorySpace.VMEM)

    flops = 2 * B * sum(int(w.shape[0]) * int(w.shape[1]) for w in (*enc_ws, whead))
    flops += 2 * S * B * sum(int(w.shape[0]) * int(w.shape[1]) for w in dec_ws)
    bytes_accessed = 4 * (int(x.size) + int(eps2d.size)
                          + int(enc_bias.size) + int(dec_bias.size)
                          + sum(int(w.size) for w in (*enc_ws, whead, *dec_ws))
                          + S * B * D + B * 2 * L)

    out2d, zstats = pl.pallas_call(
        functools.partial(vae_kernel, n_enc=n_enc, n_dec=n_dec),
        out_shape=(jax.ShapeDtypeStruct((S * B, D), jnp.float32),
                   jax.ShapeDtypeStruct((B, 2 * L), jnp.float32)),
        in_specs=[vmem] * len(args),
        out_specs=(vmem, vmem),
        cost_estimate=pl.CostEstimate(flops=flops, transcendentals=B * L,
                                      bytes_accessed=bytes_accessed),
    )(*args)

    out = out2d.reshape(S, B, D)
    return out, zstats[:, :L], zstats[:, L:]


# ----------------------------------------------------------------------------
# Parameter init (PyTorch-style) and packing for the kernel
# ----------------------------------------------------------------------------
def init_linear(key, fan_in, fan_out):
    kw, kb = jax.random.split(key)
    bound = 1.0 / jnp.sqrt(jnp.float32(fan_in))
    w = jax.random.uniform(kw, (fan_in, fan_out), jnp.float32, -bound, bound)
    b = jax.random.uniform(kb, (fan_out,), jnp.float32, -bound, bound)
    return w, b


def init_vae_params(key, input_dim, latent_dim=2,
                    enc_hidden=(16, 8, 2), dec_hidden=(2, 8, 16)):
    n_layers = len(enc_hidden) + 2 + len(dec_hidden) + 1
    k = iter(jax.random.split(key, n_layers))

    enc_ws, enc_bs = [], []
    dims = (input_dim,) + tuple(enc_hidden)
    for i in range(len(dims) - 1):
        w, b = init_linear(next(k), dims[i], dims[i + 1])
        enc_ws.append(w); enc_bs.append(b)
    wm, bm = init_linear(next(k), enc_hidden[-1], latent_dim)
    wv, bv = init_linear(next(k), enc_hidden[-1], latent_dim)

    dec_ws, dec_bs = [], []
    dims = (latent_dim,) + tuple(dec_hidden) + (input_dim,)
    for i in range(len(dims) - 1):
        w, b = init_linear(next(k), dims[i], dims[i + 1])
        dec_ws.append(w); dec_bs.append(b)

    return dict(enc_ws=enc_ws, enc_bs=enc_bs, wm=wm, bm=bm, wv=wv, bv=bv,
                dec_ws=dec_ws, dec_bs=dec_bs)


def _stack_padded(biases):
    width = max(int(b.shape[0]) for b in biases)
    return jnp.stack([jnp.pad(b, (0, width - int(b.shape[0]))) for b in biases])


def pack_vae_params(params):
    """Fuse the mean/logvar heads and pack all biases into one array per net."""
    whead = jnp.concatenate([params["wm"], params["wv"]], axis=1)     # (H, 2L)
    bhead = jnp.concatenate([params["bm"], params["bv"]], axis=0)     # (2L,)
    enc_bias = _stack_padded(list(params["enc_bs"]) + [bhead])
    dec_bias = _stack_padded(list(params["dec_bs"]))
    return (tuple(params["enc_ws"]), whead, enc_bias,
            tuple(params["dec_ws"]), dec_bias)


# ----------------------------------------------------------------------------
# Pure-JAX reference
# ----------------------------------------------------------------------------
def vae_forward_ref(x, epsilon, params):
    h = x
    for w, b in zip(params["enc_ws"], params["enc_bs"]):
        h = jnp.maximum(h @ w + b, 0.0)
    z_mean = h @ params["wm"] + params["bm"]
    z_log_var = h @ params["wv"] + params["bv"]
    z = z_mean + jnp.exp(0.5 * z_log_var) * epsilon            # (S, B, L)
    h = z
    ws, bs = params["dec_ws"], params["dec_bs"]
    for w, b in zip(ws[:-1], bs[:-1]):
        h = jnp.maximum(h @ w + b, 0.0)
    out = h @ ws[-1] + bs[-1]
    return out, z_mean, z_log_var


if __name__ == "__main__":
    key = jax.random.PRNGKey(0)
    k_param, k_x, k_eps = jax.random.split(key, 3)

    batch = 8
    input_dim = 32
    latent_dim = 2
    sample_size = 4

    params = init_vae_params(k_param, input_dim, latent_dim)
    packed = pack_vae_params(params)

    x = jax.random.normal(k_x, (batch, input_dim), jnp.float32)
    # torch.randn(sample_size, *z_mean.shape) equivalent, generated up front.
    epsilon = jax.random.normal(k_eps, (sample_size, batch, latent_dim), jnp.float32)

    out, z_mean, z_log_var = vae_forward(x, epsilon, *packed)
    jax.block_until_ready((out, z_mean, z_log_var))

    out_r, zm_r, zv_r = vae_forward_ref(x, epsilon, params)
    assert out.shape == (sample_size, batch, input_dim)
    assert z_mean.shape == (batch, latent_dim)
    assert z_log_var.shape == (batch, latent_dim)
    assert jnp.allclose(z_mean, zm_r, atol=1e-4, rtol=1e-4)
    assert jnp.allclose(z_log_var, zv_r, atol=1e-4, rtol=1e-4)
    assert jnp.allclose(out, out_r, atol=1e-4, rtol=1e-4)

    print("KERNEL_OK")
</pallas_src>

<mosaic_0001>
module attributes {stable_mosaic.version = 11 : i64} {
  func.func @vae_kernel(%arg0: memref<8x32xf32, #tpu.memory_space<vmem>>, %arg1: memref<32x2xf32, #tpu.memory_space<vmem>>, %arg2: memref<32x16xf32, #tpu.memory_space<vmem>>, %arg3: memref<16x8xf32, #tpu.memory_space<vmem>>, %arg4: memref<8x2xf32, #tpu.memory_space<vmem>>, %arg5: memref<2x4xf32, #tpu.memory_space<vmem>>, %arg6: memref<4x16xf32, #tpu.memory_space<vmem>>, %arg7: memref<2x2xf32, #tpu.memory_space<vmem>>, %arg8: memref<2x8xf32, #tpu.memory_space<vmem>>, %arg9: memref<8x16xf32, #tpu.memory_space<vmem>>, %arg10: memref<16x32xf32, #tpu.memory_space<vmem>>, %arg11: memref<4x32xf32, #tpu.memory_space<vmem>>, %arg12: memref<32x32xf32, #tpu.memory_space<vmem>>, %arg13: memref<8x4xf32, #tpu.memory_space<vmem>>) attributes {dimension_semantics = [], scalar_prefetch = 0 : i64, scratch_operands = 0 : i64, tpu.core_type = #tpu.core_type<tc>} {
    %c0 = arith.constant 0 : index
    %c0_0 = arith.constant 0 : index
    %0 = vector.load %arg0[%c0, %c0_0] : memref<8x32xf32, #tpu.memory_space<vmem>>, vector<8x32xf32>
    %c0_1 = arith.constant 0 : index
    %c0_2 = arith.constant 0 : index
    %1 = vector.load %arg6[%c0_1, %c0_2] : memref<4x16xf32, #tpu.memory_space<vmem>>, vector<1x16xf32>
    %c0_3 = arith.constant 0 : index
    %c0_4 = arith.constant 0 : index
    %2 = vector.load %arg2[%c0_3, %c0_4] : memref<32x16xf32, #tpu.memory_space<vmem>>, vector<32x16xf32>
    %cst = arith.constant dense<0.000000e+00> : vector<8x16xf32>
    %3 = tpu.matmul %0, %2, %cst {dimension_numbers = #tpu.dot_dimension_numbers<[1], [0], [0], [1], [0, 0, 1, 1], [], []>} : vector<8x32xf32>, vector<32x16xf32>, vector<8x16xf32> -> vector<8x16xf32>
    %4 = vector.broadcast %1 : vector<1x16xf32> to vector<8x16xf32>
    %5 = arith.addf %3, %4 : vector<8x16xf32>
    %cst_5 = arith.constant 0.000000e+00 : f32
    %6 = vector.broadcast %cst_5 : f32 to vector<8x16xf32>
    %7 = arith.maximumf %5, %6 : vector<8x16xf32>
    %c1 = arith.constant 1 : index
    %c0_6 = arith.constant 0 : index
    %8 = vector.load %arg6[%c1, %c0_6] : memref<4x16xf32, #tpu.memory_space<vmem>>, vector<1x8xf32>
    %c0_7 = arith.constant 0 : index
    %c0_8 = arith.constant 0 : index
    %9 = vector.load %arg3[%c0_7, %c0_8] : memref<16x8xf32, #tpu.memory_space<vmem>>, vector<16x8xf32>
    %cst_9 = arith.constant dense<0.000000e+00> : vector<8x8xf32>
    %10 = tpu.matmul %7, %9, %cst_9 {dimension_numbers = #tpu.dot_dimension_numbers<[1], [0], [0], [1], [0, 0, 1, 1], [], []>} : vector<8x16xf32>, vector<16x8xf32>, vector<8x8xf32> -> vector<8x8xf32>
    %11 = vector.broadcast %8 : vector<1x8xf32> to vector<8x8xf32>
    %12 = arith.addf %10, %11 : vector<8x8xf32>
    %cst_10 = arith.constant 0.000000e+00 : f32
    %13 = vector.broadcast %cst_10 : f32 to vector<8x8xf32>
    %14 = arith.maximumf %12, %13 : vector<8x8xf32>
    %c2 = arith.constant 2 : index
    %c0_11 = arith.constant 0 : index
    %15 = vector.load %arg6[%c2, %c0_11] : memref<4x16xf32, #tpu.memory_space<vmem>>, vector<1x2xf32>
    %c0_12 = arith.constant 0 : index
    %c0_13 = arith.constant 0 : index
    %16 = vector.load %arg4[%c0_12, %c0_13] : memref<8x2xf32, #tpu.memory_space<vmem>>, vector<8x2xf32>
    %cst_14 = arith.constant dense<0.000000e+00> : vector<8x2xf32>
    %17 = tpu.matmul %14, %16, %cst_14 {dimension_numbers = #tpu.dot_dimension_numbers<[1], [0], [0], [1], [0, 0, 1, 1], [], []>} : vector<8x8xf32>, vector<8x2xf32>, vector<8x2xf32> -> vector<8x2xf32>
    %18 = vector.broadcast %15 : vector<1x2xf32> to vector<8x2xf32>
    %19 = arith.addf %17, %18 : vector<8x2xf32>
    %cst_15 = arith.constant 0.000000e+00 : f32
    %20 = vector.broadcast %cst_15 : f32 to vector<8x2xf32>
    %21 = arith.maximumf %19, %20 : vector<8x2xf32>
    %c3 = arith.constant 3 : index
    %c0_16 = arith.constant 0 : index
    %22 = vector.load %arg6[%c3, %c0_16] : memref<4x16xf32, #tpu.memory_space<vmem>>, vector<1x4xf32>
    %c0_17 = arith.constant 0 : index
    %c0_18 = arith.constant 0 : index
    %23 = vector.load %arg5[%c0_17, %c0_18] : memref<2x4xf32, #tpu.memory_space<vmem>>, vector<2x4xf32>
    %cst_19 = arith.constant dense<0.000000e+00> : vector<8x4xf32>
    %24 = tpu.matmul %21, %23, %cst_19 {dimension_numbers = #tpu.dot_dimension_numbers<[1], [0], [0], [1], [0, 0, 1, 1], [], []>} : vector<8x2xf32>, vector<2x4xf32>, vector<8x4xf32> -> vector<8x4xf32>
    %25 = vector.broadcast %22 : vector<1x4xf32> to vector<8x4xf32>
    %26 = arith.addf %24, %25 : vector<8x4xf32>
    %c0_20 = arith.constant 0 : index
    %c0_21 = arith.constant 0 : index
    %27 = vector.load %arg13[%c0_20, %c0_21] : memref<8x4xf32, #tpu.memory_space<vmem>>, vector<8x4xf32>
    tpu.vector_store %arg13[%c0_20, %c0_21], %26 {strides = array<i32>} : memref<8x4xf32, #tpu.memory_space<vmem>>, vector<8x4xf32>,
    %28 = vector.extract_strided_slice %26 {offsets = [0, 0], sizes = [8, 2], strides = [1, 1]} : vector<8x4xf32> to vector<8x2xf32>
    %29 = vector.extract_strided_slice %26 {offsets = [0, 2], sizes = [8, 2], strides = [1, 1]} : vector<8x4xf32> to vector<8x2xf32>
    %cst_22 = arith.constant 5.000000e-01 : f32
    %30 = vector.broadcast %cst_22 : f32 to vector<8x2xf32>
    %31 = arith.mulf %30, %29 : vector<8x2xf32>
    %32 = math.exp %31 : vector<8x2xf32>
    %33 = tpu.concatenate %28, %28, %28, %28 in 0 : vector<8x2xf32>, vector<8x2xf32>, vector<8x2xf32>, vector<8x2xf32> -> vector<32x2xf32>
    %34 = tpu.concatenate %32, %32, %32, %32 in 0 : vector<8x2xf32>, vector<8x2xf32>, vector<8x2xf32>, vector<8x2xf32> -> vector<32x2xf32>
    %c0_23 = arith.constant 0 : index
    %c0_24 = arith.constant 0 : index
    %35 = vector.load %arg1[%c0_23, %c0_24] : memref<32x2xf32, #tpu.memory_space<vmem>>, vector<32x2xf32>
    %36 = arith.mulf %34, %35 : vector<32x2xf32>
    %37 = arith.addf %33, %36 : vector<32x2xf32>
    %c0_25 = arith.constant 0 : index
    %c0_26 = arith.constant 0 : index
    %38 = vector.load %arg11[%c0_25, %c0_26] : memref<4x32xf32, #tpu.memory_space<vmem>>, vector<1x2xf32>
    %c0_27 = arith.constant 0 : index
    %c0_28 = arith.constant 0 : index
    %39 = vector.load %arg7[%c0_27, %c0_28] : memref<2x2xf32, #tpu.memory_space<vmem>>, vector<2x2xf32>
    %cst_29 = arith.constant dense<0.000000e+00> : vector<32x2xf32>
    %40 = tpu.matmul %37, %39, %cst_29 {dimension_numbers = #tpu.dot_dimension_numbers<[1], [0], [0], [1], [0, 0, 1, 1], [], []>} : vector<32x2xf32>, vector<2x2xf32>, vector<32x2xf32> -> vector<32x2xf32>
    %41 = vector.broadcast %38 : vector<1x2xf32> to vector<32x2xf32>
    %42 = arith.addf %40, %41 : vector<32x2xf32>
    %cst_30 = arith.constant 0.000000e+00 : f32
    %43 = vector.broadcast %cst_30 : f32 to vector<32x2xf32>
    %44 = arith.maximumf %42, %43 : vector<32x2xf32>
    %c1_31 = arith.constant 1 : index
    %c0_32 = arith.constant 0 : index
    %45 = vector.load %arg11[%c1_31, %c0_32] : memref<4x32xf32, #tpu.memory_space<vmem>>, vector<1x8xf32>
    %c0_33 = arith.constant 0 : index
    %c0_34 = arith.constant 0 : index
    %46 = vector.load %arg8[%c0_33, %c0_34] : memref<2x8xf32, #tpu.memory_space<vmem>>, vector<2x8xf32>
    %cst_35 = arith.constant dense<0.000000e+00> : vector<32x8xf32>
    %47 = tpu.matmul %44, %46, %cst_35 {dimension_numbers = #tpu.dot_dimension_numbers<[1], [0], [0], [1], [0, 0, 1, 1], [], []>} : vector<32x2xf32>, vector<2x8xf32>, vector<32x8xf32> -> vector<32x8xf32>
    %48 = vector.broadcast %45 : vector<1x8xf32> to vector<32x8xf32>
    %49 = arith.addf %47, %48 : vector<32x8xf32>
    %cst_36 = arith.constant 0.000000e+00 : f32
    %50 = vector.broadcast %cst_36 : f32 to vector<32x8xf32>
    %51 = arith.maximumf %49, %50 : vector<32x8xf32>
    %c2_37 = arith.constant 2 : index
    %c0_38 = arith.constant 0 : index
    %52 = vector.load %arg11[%c2_37, %c0_38] : memref<4x32xf32, #tpu.memory_space<vmem>>, vector<1x16xf32>
    %c0_39 = arith.constant 0 : index
    %c0_40 = arith.constant 0 : index
    %53 = vector.load %arg9[%c0_39, %c0_40] : memref<8x16xf32, #tpu.memory_space<vmem>>, vector<8x16xf32>
    %cst_41 = arith.constant dense<0.000000e+00> : vector<32x16xf32>
    %54 = tpu.matmul %51, %53, %cst_41 {dimension_numbers = #tpu.dot_dimension_numbers<[1], [0], [0], [1], [0, 0, 1, 1], [], []>} : vector<32x8xf32>, vector<8x16xf32>, vector<32x16xf32> -> vector<32x16xf32>
    %55 = vector.broadcast %52 : vector<1x16xf32> to vector<32x16xf32>
    %56 = arith.addf %54, %55 : vector<32x16xf32>
    %cst_42 = arith.constant 0.000000e+00 : f32
    %57 = vector.broadcast %cst_42 : f32 to vector<32x16xf32>
    %58 = arith.maximumf %56, %57 : vector<32x16xf32>
    %c3_43 = arith.constant 3 : index
    %c0_44 = arith.constant 0 : index
    %59 = vector.load %arg11[%c3_43, %c0_44] : memref<4x32xf32, #tpu.memory_space<vmem>>, vector<1x32xf32>
    %c0_45 = arith.constant 0 : index
    %c0_46 = arith.constant 0 : index
    %60 = vector.load %arg10[%c0_45, %c0_46] : memref<16x32xf32, #tpu.memory_space<vmem>>, vector<16x32xf32>
    %cst_47 = arith.constant dense<0.000000e+00> : vector<32x32xf32>
    %61 = tpu.matmul %58, %60, %cst_47 {dimension_numbers = #tpu.dot_dimension_numbers<[1], [0], [0], [1], [0, 0, 1, 1], [], []>} : vector<32x16xf32>, vector<16x32xf32>, vector<32x32xf32> -> vector<32x32xf32>
    %62 = vector.broadcast %59 : vector<1x32xf32> to vector<32x32xf32>
    %63 = arith.addf %61, %62 : vector<32x32xf32>
    %c0_48 = arith.constant 0 : index
    %c0_49 = arith.constant 0 : index
    %64 = vector.load %arg12[%c0_48, %c0_49] : memref<32x32xf32, #tpu.memory_space<vmem>>, vector<32x32xf32>
    tpu.vector_store %arg12[%c0_48, %c0_49], %63 {strides = array<i32>} : memref<32x32xf32, #tpu.memory_space<vmem>>, vector<32x32xf32>,
    return
  }
}

</mosaic_0001>

<bundles_post_ra>
// kernel: vae_forward.1
= control target key start
LH: loop header
LB: loop body
LE: loop exit
PB: predicated region body
PF: predicated region fallthrough
CT: control target
= control target key end

     0   :  { %v1053_v3 = vmov 0.0|0.0   ;;  %vm1054_vm0 = vmmov 0   ;;  %v1055_v6 = vmov 0.0   ;;  %s1257_s0 = inlined_call_operand.vmem [shape: f32[8,32], index: 0, kind: input, shape index: {}]   ;;  %s1258_s1 = inlined_call_operand.vmem [shape: f32[32,2], index: 1, kind: input, shape index: {}]   ;;  %s1259_s2 = inlined_call_operand.vmem [shape: f32[32,16], index: 2, kind: input, shape index: {}]   ;;  %s1260_s3 = inlined_call_operand.vmem [shape: f32[16,8], index: 3, kind: input, shape index: {}]   ;;  %s1261_s4 = inlined_call_operand.vmem [shape: f32[8,2], index: 4, kind: input, shape index: {}]   ;;  %s1262_s5 = inlined_call_operand.vmem [shape: f32[2,4], index: 5, kind: input, shape index: {}]   ;;  %s1263_s6 = inlined_call_operand.vmem [shape: f32[4,16], index: 6, kind: input, shape index: {}]   ;;  %s1264_s7 = inlined_call_operand.vmem [shape: f32[2,2], index: 7, kind: input, shape index: {}]   ;;  %s1265_s8 = inlined_call_operand.vmem [shape: f32[2,8], index: 8, kind: input, shape index: {}]   ;;  %s1266_s9 = inlined_call_operand.vmem [shape: f32[8,16], index: 9, kind: input, shape index: {}]   ;;  %s1267_s10 = inlined_call_operand.vmem [shape: f32[16,32], index: 10, kind: input, shape index: {}]   ;;  %s1268_s11 = inlined_call_operand.vmem [shape: f32[4,32], index: 11, kind: input, shape index: {}]   ;;  %s1269_s12 = inlined_call_operand.hbm [shape: f32[32,32], index: 12, kind: output, shape index: {0}]   ;;  %s1270_s13 = inlined_call_operand.vmem [shape: f32[8,4], index: 13, kind: output, shape index: {1}]  }
   0x1   :  { %v46_v0 = vld [vmem:[%s1259_s2] sm:$0xff]  ;;  %v47_v1 = vld [vmem:[%s1259_s2 + $0x8] sm:$0xff]  ;;  %v48_v2 = vld [vmem:[%s1259_s2 + $0x10] sm:$0xff]  ;;  %1006 = vmatprep.subr.bf16.mxu0 %v1053_v3  ;;  %952 = vmatprep.mubr.msk.f32.mxu0 %vm1054_vm0, %v1055_v6 }
   0x2   :  { %v1007_v4 = vpack.c.bf16 %v47_v1, %v46_v0  ;;  %v49_v5 = vld [vmem:[%s1259_s2 + $0x18] sm:$0xff]  ;;  %1012 = vmatprep.subr.bf16.mxu1 %v1053_v3  ;;  %959 = vmatprep.mubr.msk.f32.mxu1 %vm1054_vm0, %v1055_v6 }
   0x3   :  { %19 = vsyncpa [#allocation3], 0  ;;  %v1010_v7 = vpack.c.bf16 %v49_v5, %v48_v2  ;;  %v44_v8 = vld [vmem:[%s1257_s0] sm:$0xff]  ;;  %vm54_vm1 = vcmask 261120   ;;  %v131_v10 = vld [vmem:[%s1260_s3 + $0x8] sm:$0xff]  ;;  %vm136_vm2 = vcmask 130048  }
   0x4   :  { %1008 = vmatpush3.bf16.msra.mxu0 %v1007_v4  ;;  %v130_v9 = vld [vmem:[%s1260_s3] sm:$0xff]  ;;  %vm217_vm3 = vcmask 64512   ;;  %vm302_vm4 = vcmask 1041408   ;;  %v383_v24 = vld [vmem:[%s1258_s1 + $0x10] sm:$0xff]  ;;  %s1056_s30 = smov 2   ;;  %v384_v26 = vld [vmem:[%s1258_s1 + $0x18] sm:$0xff] }
   0x5   :  { %1009 = vmatprep.subr.bf16.mxu0 %v1053_v3  ;;  %v1013_v11 = vpack.c.bf16 %v131_v10, %v130_v9  ;;  %v880_v12 = vld [vmem:[%s1263_s6] ss:$0 sm:$0xff]  ;;  %v882_v18 = vld [vmem:[%s1263_s6 + $0x1] ss:$0 sm:$0xff]  ;;  %393 = vrot.lane.b32.xlu1 %v383_v24, %s1056_s30  ;;  %v382_v27 = vld [vmem:[%s1258_s1 + $0x8] sm:$0xff]  ;;  %vm298_vm5 = vcmask 15360  }
   0x6   :  { %v212_v17 = vld [vmem:[%s1261_s4] sm:$0xff]  ;;  %vm376_vm6 = vcmask 31744   ;;  %v754_v9 = vld [vmem:[%s1267_s10 + $0x8] sm:$0xff]  ;;  %s1058_s14 = smov [#allocation2]  }
   0x7   :  { %1014 = vmatpush3.bf16.msra.mxu1 %v1013_v11  ;;  %v293_v23 = vld [vmem:[%s1262_s5] sm:$0x3]  ;;  %v884_v28 = vld [vmem:[%s1263_s6 + $0x2] ss:$0 sm:$0xff]  ;;  %v886_v34 = vld [vmem:[%s1263_s6 + $0x3] ss:$0 sm:$0xff] }
   0x8   :  { %1011 = vmatpush3.bf16.msra.mxu0 %v1010_v7  ;;  %962 = vmatprep.subr.mxu1 %v1055_v6  ;;  %v381_v25 = vld [vmem:[%s1258_s1] sm:$0xff]  ;;  %s865_s15 = sshll.u32 %s1058_s14, 4  ;;  %s866_s15 = int_to_ptr.vmem [resolvable:$true] %s865_s15 }
   0x9   :  { %967 = vmatprep.subr.mxu0 %v1055_v6  ;;  %389 = vrot.lane.b32.xlu0 %v381_v25, %s1056_s30  ;;  %v426_v33 = vld [vmem:[%s1264_s7] sm:$0x3]  ;;  %s1057_s7 = smov 126   ;;  %v901_v24 = vld [vmem:[%s1268_s11 + $0x2] ss:$0 sm:$0xff]  ;;  %p1034_p1 = scmp.lt.s32.totalorder %s866_s15, %s866_s15 }
   0xa   :  { %395 = vrot.lane.b32.xlu1 %v384_v26, %s1056_s30  ;;  %v536_v57 = vld [vmem:[%s1265_s8] sm:$0x3] }
   0xb   :  { %953 = vmatmul.mubr.msk.f32.vlgmr.msra.gmra.mrb[0].mxu0 %vm54_vm1, %v44_v8  ;;  %v646_v58 = vld [vmem:[%s1266_s9] sm:$0xff] }
   0xc   :  { %969 = vmatprep.mubr.msk.f32.mxu0 %vm1054_vm0, %v1055_v6  ;;  %968 = vmatpush3.msk.msra.mxu0 %vm302_vm4, %v293_v23  ;;  %v889_v59 = vld [vmem:[%s1268_s11] ss:$0 sm:$0xff]  ;;  %v895_v11 = vld [vmem:[%s1268_s11 + $0x1] ss:$0 sm:$0xff] }
   0xd   :  { %391 = vrot.lane.b32.xlu0 %v382_v27, %s1056_s30  ;;  %980 = vmatprep.subr.msk.mxu0 %vm302_vm4, %v536_v57  ;;  %v753_v8 = vld [vmem:[%s1267_s10] sm:$0xff] }
   0xe   :  { %v1015_v10 = vpack.c.bf16 %v754_v9, %v753_v8 }
  0x77   :  { %v394_v41 = vpop.permute.xlu1 %393 }
  0x7b   :  { %v390_v40 = vpop.permute.xlu0 %389 }
  0x7c   :  { %v396_v46 = vpop.permute.xlu1 %395 }
  0x7f   :  { %v392_v42 = vpop.permute.xlu0 %391 }
  0xde   :  { %v124_v13 = vpop.f32.mrb[0].mxu0 }
  0xdf   :  { %v125_v14 = vadd.f32 %v880_v12, %v124_v13  ;;  %v954_v15 = vpop.f32.mrb[1].mxu0 }
  0xe1   :  { %v128_v16 = vmax.f32 %v125_v14, 0.0 }
  0xe3   :  { %960 = vmatmul.mubr.msk.f32.vlgmr.msra.gmra.mrb[0].mxu1 %vm136_vm2, %v128_v16 }
  0xe4   :  { %964 = vmatprep.mubr.msk.f32.mxu1 %vm1054_vm0, %v1055_v6  ;;  %963 = vmatpush3.msra.mxu1 %v212_v17 }
  0xe5   :  { %972 = vmatprep.subr.msk.mxu1 %vm302_vm4, %v426_v33 }
 0x1b6   :  { %v206_v19 = vpop.f32.mrb[0].mxu1 }
 0x1b7   :  { %v207_v20 = vadd.f32 %v882_v18, %v206_v19  ;;  %v961_v21 = vpop.f32.mrb[1].mxu1 }
 0x1b9   :  { %v210_v22 = vmax.f32 %v207_v20, 0.0 }
 0x1bb   :  { %965 = vmatmul.mubr.msk.f32.vlgmr.msra.gmra.mrb[2].mxu1 %vm217_vm3, %v210_v22 }
 0x1bc   :  { %973 = vmatpush3.msk.msra.mxu1 %vm302_vm4, %v426_v33 }
 0x1bd   :  { %988 = vmatprep.subr.mxu1 %v646_v58 }
 0x28e   :  { %v287_v29 = vpop.f32.mrb[2].mxu1 }
 0x28f   :  { %v288_v30 = vadd.f32 %v884_v28, %v287_v29  ;;  %v966_v31 = vpop.f32.mrb[3].mxu1 }
 0x291   :  { %v291_v32 = vmax.f32 %v288_v30, 0.0 }
 0x293   :  { %970 = vmatmul.mubr.msk.f32.vlgmr.msra.gmra.mrb[2].mxu0 %vm298_vm5, %v291_v32 }
 0x294   :  { %981 = vmatpush3.msk.msra.mxu0 %vm302_vm4, %v536_v57 }
 0x295   :  { %1016 = vmatprep.subr.bf16.mxu0 %v1015_v10 }
 0x366   :  { %v372_v35 = vpop.f32.mrb[2].mxu0 }
 0x367   :  { %v373_v36 = vadd.f32 %v886_v34, %v372_v35  ;;  %v971_v37 = vpop.f32.mrb[3].mxu0 }
 0x368   :  { %v906_v37 = vld [vmem:[%s1268_s11 + $0x3] ss:$0 sm:$0xff]  ;;  %s1029_s11 = scalar_lea.vmem %s866_s15, 512 }
 0x369   :  { %377 = vst.msk [vmem:[%s1270_s13] sm:$0xff] %vm376_vm6, %v373_v36  ;;  %v378_v38 = vmul.f32 0.5, %v373_v36  ;;  %p1030_p0 = scmp.ne.s32.totalorder %s866_s15, %s1029_s11  ;;  %p1035_p2 = scmp.lt.s32.totalorder %s1029_s11, %s1029_s11 }
 0x36b   :  { %v379_v39 = vmul.f32 1.442695, %v378_v38  ;;  %p1036_p3 = por %p1035_p2, %p1034_p1 }
 0x36d   :  { %1027 = vpow2.f32 %v379_v39  ;;  %p1037_p4 = pnand %p1036_p3, %p1030_p0 }
 0x377   :  { %v1028_v43 = vpop.eup %1027 }
 0x378   :  { %v401_v44 = vmul.f32 %v1028_v43, %v390_v40  ;;  %v402_v45 = vmul.f32 %v1028_v43, %v392_v42  ;;  %v403_v47 = vmul.f32 %v1028_v43, %v394_v41  ;;  %v404_v48 = vmul.f32 %v1028_v43, %v396_v46 }
 0x37a   :  { %411 = vrot.lane.b32.xlu1 %v402_v45, %s1057_s7  ;;  %409 = vrot.lane.b32.xlu0 %v401_v44, %s1057_s7 }
 0x37e   :  { %415 = vrot.lane.b32.xlu1 %v404_v48, %s1057_s7  ;;  %413 = vrot.lane.b32.xlu0 %v403_v47, %s1057_s7 }
 0x3ec   :  { %v412_v49 = vpop.permute.xlu1 %411  ;;  %v410_v50 = vpop.permute.xlu0 %409 }
 0x3ed   :  { %v422_v51 = vadd.f32 %v412_v49, %v373_v36  ;;  %v421_v52 = vadd.f32 %v410_v50, %v373_v36 }
 0x3ef   :  { %974 = vmatprep.mubr.msk.f32.mxu1 %vm298_vm5, %v421_v52 }
 0x3f0   :  { %v416_v53 = vpop.permute.xlu1 %415  ;;  %975 = vmatmul.mubr.msk.f32.vlgmr.msra.gmra.mrb[4].mxu1 %vm298_vm5, %v422_v51  ;;  %v414_v54 = vpop.permute.xlu0 %413 }
 0x3f1   :  { %v424_v55 = vadd.f32 %v416_v53, %v373_v36  ;;  %v423_v56 = vadd.f32 %v414_v54, %v373_v36  ;;  %989 = vmatpush3.msra.mxu1 %v646_v58 }
 0x3f3   :  { %977 = vmatprep.mubr.msk.f32.mxu1 %vm298_vm5, %v423_v56 }
 0x3f4   :  { %978 = vmatmul.mubr.msk.f32.gmra.mrb[6].mxu1 %vm298_vm5, %v424_v55 }
 0x4c3   :  { %v976_v60 = vpop.f32.mrb[4].mxu1 }
 0x4c4   :  { %v518_v61 = vadd.f32 %v976_v60, %v889_v59  ;;  %v512_v62 = vpop.f32.mrb[5].mxu1 }
 0x4c5   :  { %v513_v63 = vadd.f32 %v889_v59, %v512_v62 }
 0x4c6   :  { %v532_v2 = vmax.f32 %v518_v61, 0.0 }
 0x4c7   :  { %v531_v0 = vmax.f32 %v513_v63, 0.0  ;;  %v979_v1 = vpop.f32.mrb[6].mxu1 }
 0x4c8   :  { %v528_v3 = vadd.f32 %v979_v1, %v889_v59  ;;  %v522_v4 = vpop.f32.mrb[7].mxu1 }
 0x4c9   :  { %v523_v5 = vadd.f32 %v889_v59, %v522_v4  ;;  %982 = vmatprep.mubr.msk.f32.mxu0 %vm298_vm5, %v531_v0 }
 0x4ca   :  { %983 = vmatmul.mubr.msk.f32.vlgmr.msra.gmra.mrb[4].mxu0 %vm298_vm5, %v532_v2  ;;  %v534_v7 = vmax.f32 %v528_v3, 0.0 }
 0x4cb   :  { %v533_v6 = vmax.f32 %v523_v5, 0.0  ;;  %1018 = vmatpush3.bf16.msra.mxu0 %v1015_v10 }
 0x4cd   :  { %985 = vmatprep.mubr.msk.f32.mxu0 %vm298_vm5, %v533_v6 }
 0x4ce   :  { %986 = vmatmul.mubr.msk.f32.gmra.mrb[6].mxu0 %vm298_vm5, %v534_v7 }
 0x59d   :  { %v984_v12 = vpop.f32.mrb[4].mxu0 }
 0x59e   :  { %v628_v13 = vadd.f32 %v984_v12, %v895_v11  ;;  %v622_v14 = vpop.f32.mrb[5].mxu0 }
 0x59f   :  { %v623_v15 = vadd.f32 %v895_v11, %v622_v14 }
 0x5a0   :  { %v642_v18 = vmax.f32 %v628_v13, 0.0 }
 0x5a1   :  { %v641_v16 = vmax.f32 %v623_v15, 0.0  ;;  %v987_v17 = vpop.f32.mrb[6].mxu0 }
 0x5a2   :  { %v638_v19 = vadd.f32 %v987_v17, %v895_v11  ;;  %v632_v20 = vpop.f32.mrb[7].mxu0 }
 0x5a3   :  { %v633_v21 = vadd.f32 %v895_v11, %v632_v20  ;;  %990 = vmatprep.mubr.msk.f32.mxu1 %vm217_vm3, %v641_v16 }
 0x5a4   :  { %991 = vmatmul.mubr.msk.f32.vlgmr.msra.gmra.mrb[8].mxu1 %vm217_vm3, %v642_v18  ;;  %v644_v23 = vmax.f32 %v638_v19, 0.0 }
 0x5a5   :  { %v643_v22 = vmax.f32 %v633_v21, 0.0 }
 0x5a7   :  { %993 = vmatprep.mubr.msk.f32.mxu1 %vm217_vm3, %v643_v22 }
 0x5a8   :  { %994 = vmatmul.mubr.msk.f32.gmra.mrb[10].mxu1 %vm217_vm3, %v644_v23 }
 0x677   :  { %v992_v25 = vpop.f32.mrb[8].mxu1 }
 0x678   :  { %v735_v26 = vadd.f32 %v992_v25, %v901_v24  ;;  %v729_v27 = vpop.f32.mrb[9].mxu1 }
 0x679   :  { %v730_v28 = vadd.f32 %v901_v24, %v729_v27 }
 0x67a   :  { %v749_v31 = vmax.f32 %v735_v26, 0.0 }
 0x67b   :  { %v748_v29 = vmax.f32 %v730_v28, 0.0  ;;  %v995_v30 = vpop.f32.mrb[10].mxu1 }
 0x67c   :  { %v745_v32 = vadd.f32 %v995_v30, %v901_v24  ;;  %v739_v33 = vpop.f32.mrb[11].mxu1 }
 0x67d   :  { %v740_v34 = vadd.f32 %v901_v24, %v739_v33  ;;  %1000 = vmatprep.mubr.msk.f32.mxu0 %vm136_vm2, %v748_v29 }
 0x67e   :  { %1001 = vmatmul.mubr.msk.f32.vlgmr.msra.gmra.mrb[8].mxu0 %vm136_vm2, %v749_v31  ;;  %v751_v36 = vmax.f32 %v745_v32, 0.0 }
 0x67f   :  { %v750_v35 = vmax.f32 %v740_v34, 0.0 }
 0x681   :  { %1003 = vmatprep.mubr.msk.f32.mxu0 %vm136_vm2, %v750_v35 }
 0x682   :  { %1004 = vmatmul.mubr.msk.f32.gmra.mrb[10].mxu0 %vm136_vm2, %v751_v36 }
 0x751   :  { %v1002_v38 = vpop.f32.mrb[8].mxu0 }
 0x752   :  { %v843_v39 = vadd.f32 %v1002_v38, %v906_v37  ;;  %v837_v40 = vpop.f32.mrb[9].mxu0 }
 0x753   :  { %v838_v41 = vadd.f32 %v906_v37, %v837_v40 }
 0x754   :  { %857 = vst.msk [vmem:[#allocation2 + $0x8] sm:$0xff] %vm54_vm1, %v843_v39 }
 0x755   :  { %856 = vst.msk [vmem:[#allocation2] sm:$0xff] %vm54_vm1, %v838_v41  ;;  %v1005_v42 = vpop.f32.mrb[10].mxu0 }
 0x756   :  { %v853_v43 = vadd.f32 %v1005_v42, %v906_v37  ;;  %v847_v44 = vpop.f32.mrb[11].mxu0 }
 0x757   :  { %v848_v45 = vadd.f32 %v906_v37, %v847_v44 }
 0x758   :  { %859 = vst.msk [vmem:[#allocation2 + $0x18] sm:$0xff] %vm54_vm1, %v853_v43 }
 0x759   :  { %858 = vst.msk [vmem:[#allocation2 + $0x10] sm:$0xff] %vm54_vm1, %v848_v45 }
 0x75a   :  { %1040 = shalt.err (!%p1037_p4)
}
 0x75b   :  { %s1041_s17 = scalar_lea.hbm %s1269_s12, 512 }
 0x75c   :  { %p1042_p5 = scmp.ne.s32.totalorder %s1269_s12, %s1041_s17  ;;  %p1045_p6 = scmp.lt.u32.totalorder %s1041_s17, %s1269_s12 }
 0x75e   :  { %p1047_p7 = pnand %p1045_p6, %p1042_p5 }
 0x760   :  { %1050 = shalt.err (!%p1047_p7)
}
 0x761   :  { %s1059_s20 = smov 128   ;;  %s1060_s21 = smov 8  }
 0x762   :  { %871 = dma.vmem_to_hbm [thread:$0]  %s866_s15, 512, %s1269_s12, [#allocation3], %s1059_s20, %s1059_s20, %s1060_s21  }
 0x763   :  { %1051 = dma.done.wait [#allocation3], 512  }
 0x764   :  { %1052 = vsyncadd [#allocation3], 4294966784 }
 0x765   :  { %879 = vsyncpa [#allocation3], 1 }

</bundles_post_ra>
